<compile_context>
chip_gen: v7x
topology: tpu7x:2x2x1
jax: 0.10.0
libtpu: 0.0.40
codegen_flags: <defaults>
</compile_context>

<pallas_src>
import functools
import math

import jax
import jax.numpy as jnp
from jax.experimental import pallas as pl
from jax.experimental.pallas import tpu as pltpu

# Documented accuracy knob: approximate EUP reciprocal for the softmax denominator
# (tiny relative error vs. exact PyTorch softmax; set to False for exact division).
_APPROX_SOFTMAX_RECIP = True


def _round_up(n, m):
    return ((n + m - 1) // m) * m


# ----------------------------- Pallas kernels -----------------------------

def _stem_kernel(x_ref, cls_ref, wb_ref, bb_ref, wp_ref, bp_ref, o_ref):
    # fused backbone (pointwise conv + ReLU) + input_proj + cls-token prepend
    x = x_ref[...].astype(jnp.bfloat16)                                # (L, in_ch)
    h = jnp.dot(x, wb_ref[...], preferred_element_type=jnp.float32) + bb_ref[...]
    h = jnp.maximum(h, 0.0).astype(jnp.bfloat16)
    feat = jnp.dot(h, wp_ref[...],
                   preferred_element_type=jnp.float32) + bp_ref[...]   # (L, D)
    full = jnp.concatenate([cls_ref[...], feat], axis=0)               # (S, D)
    o_ref[...] = full.astype(o_ref.dtype)                              # bf16 out


def _encoder_layer_kernel(src_ref, pos_ref,
                          wq_ref, wk_ref, wv_ref, bq_ref, bk_ref, bv_ref,
                          wo_ref, bo_ref, g1_ref, be1_ref,
                          w1_ref, b1_ref, w2_ref, b2_ref, g2_ref, be2_ref,
                          *rest, nheads, kf, eps, with_cls):
    if with_cls:
        clsw_ref, clsb_ref, out_ref, ho_ref = rest
    else:
        out_ref, ho_ref = rest

    S, D = src_ref.shape

    src = src_ref[...].astype(jnp.float32)                  # (S, D) residual stream
    x1 = (src + pos_ref[...]).astype(jnp.bfloat16)          # q/k input (src + pos)
    srcb = src.astype(jnp.bfloat16)                         # v input (cast once)

    # ---- multi-head self-attention ----------------------------------------
    # fori_loop over heads (no static unroll -> one (S,S) f32 score buffer live
    # at a time); per-head outputs staged head-major in a bf16 VMEM scratch.
    def head_body(h, carry):
        q = jnp.dot(x1, wq_ref[h], preferred_element_type=jnp.float32) + bq_ref[h]
        k = jnp.dot(x1, wk_ref[h], preferred_element_type=jnp.float32) + bk_ref[h]
        v = jnp.dot(srcb, wv_ref[h], preferred_element_type=jnp.float32) + bv_ref[h]
        # scores (q-scale is folded into wq/bq); contraction on head_dim
        s = jax.lax.dot_general(q.astype(jnp.bfloat16), k.astype(jnp.bfloat16),
                                (((1,), (1,)), ((), ())),
                                preferred_element_type=jnp.float32)      # (S, S)
        m = jnp.max(s, axis=-1, keepdims=True)
        p = jnp.exp(s - m)
        inv = pl.reciprocal(jnp.sum(p, axis=-1, keepdims=True),
                            approx=_APPROX_SOFTMAX_RECIP)
        p = (p * inv).astype(jnp.bfloat16)
        oh = jnp.dot(p, v.astype(jnp.bfloat16),
                     preferred_element_type=jnp.float32)                 # (S, hd)
        ho_ref[h] = oh.astype(jnp.bfloat16)
        return carry

    jax.lax.fori_loop(0, nheads, head_body, 0)

    # concat-heads (S, D) then ONE output projection with full contraction K = D
    heads = jnp.concatenate([ho_ref[h] for h in range(nheads)], axis=-1)  # (S, D)
    attn = jnp.dot(heads, wo_ref[...],
                   preferred_element_type=jnp.float32) + bo_ref[...]

    # residual + LayerNorm1 (f32 statistics)
    y = src + attn
    mu = jnp.mean(y, axis=-1, keepdims=True)
    yc = y - mu
    var = jnp.mean(yc * yc, axis=-1, keepdims=True)
    src1 = yc * jax.lax.rsqrt(var + eps) * g1_ref[...] + be1_ref[...]

    # ---- FFN: f-tiled reduction; the (S, ffn) intermediate never hits HBM ----
    src1b = src1.astype(jnp.bfloat16)

    def ffn_body(f, acc):
        hblk = jnp.dot(src1b, w1_ref[f],
                       preferred_element_type=jnp.float32) + b1_ref[f]
        hblk = jnp.maximum(hblk, 0.0).astype(jnp.bfloat16)               # (S, tf)
        return acc + jnp.dot(hblk, w2_ref[f], preferred_element_type=jnp.float32)

    ffn = jax.lax.fori_loop(0, kf, ffn_body, jnp.zeros((S, D), jnp.float32))

    # residual + LayerNorm2 (f32 statistics)
    y2 = src1 + ffn + b2_ref[...]
    mu2 = jnp.mean(y2, axis=-1, keepdims=True)
    y2c = y2 - mu2
    var2 = jnp.mean(y2c * y2c, axis=-1, keepdims=True)
    out = y2c * jax.lax.rsqrt(var2 + eps) * g2_ref[...] + be2_ref[...]

    if with_cls:
        # classifier epilogue on the cls-token row only (aux_loss=False):
        # saves a kernel launch and the last layer's (bs,S,D) HBM writeback.
        row0 = out[0:1, :].astype(jnp.bfloat16)                          # (1, D)
        out_ref[...] = (jnp.dot(row0, clsw_ref[...],
                                preferred_element_type=jnp.float32) + clsb_ref[...])
    else:
        out_ref[...] = out.astype(out_ref.dtype)                         # bf16 out


# ------------------------------ kernel wrappers ----------------------------

def pallas_stem(x_nlc, cls_tok, wb, bb, wp, bp):
    bs, L, in_ch = x_nlc.shape
    C = wb.shape[1]
    D = wp.shape[1]
    S = L + 1
    return pl.pallas_call(
        _stem_kernel,
        grid=(bs,),
        in_specs=[
            pl.BlockSpec((None, L, in_ch), lambda b: (b, 0, 0)),
            pl.BlockSpec((1, D), lambda b: (0, 0)),
            pl.BlockSpec((in_ch, C), lambda b: (0, 0)),
            pl.BlockSpec((1, C), lambda b: (0, 0)),
            pl.BlockSpec((C, D), lambda b: (0, 0)),
            pl.BlockSpec((1, D), lambda b: (0, 0)),
        ],
        out_specs=pl.BlockSpec((None, S, D), lambda b: (b, 0, 0)),
        out_shape=jax.ShapeDtypeStruct((bs, S, D), jnp.bfloat16),
        compiler_params=pltpu.CompilerParams(dimension_semantics=("parallel",)),
    )(x_nlc, cls_tok, wb, bb, wp, bp)


def pallas_encoder_layer(src, pos, p, nheads, cls_w=None, cls_b=None, eps=1e-5):
    """One fused encoder layer.  If cls_w/cls_b are given, returns (bs,1,NCp)
    logits computed from the cls-token row; otherwise returns the (bs,S,D)
    bf16 layer output."""
    bs, S, D = src.shape
    hd = D // nheads
    kf, _, tf = p["w1"].shape
    with_cls = cls_w is not None

    in_specs = [
        pl.BlockSpec((None, S, D), lambda b: (b, 0, 0)),        # src (bf16)
        pl.BlockSpec((S, D), lambda b: (0, 0)),                 # pos
        pl.BlockSpec((nheads, D, hd), lambda b: (0, 0, 0)),     # w_q (head-major)
        pl.BlockSpec((nheads, D, hd), lambda b: (0, 0, 0)),     # w_k
        pl.BlockSpec((nheads, D, hd), lambda b: (0, 0, 0)),     # w_v
        pl.BlockSpec((nheads, 1, hd), lambda b: (0, 0, 0)),     # b_q (pre-scaled)
        pl.BlockSpec((nheads, 1, hd), lambda b: (0, 0, 0)),     # b_k
        pl.BlockSpec((nheads, 1, hd), lambda b: (0, 0, 0)),     # b_v
        pl.BlockSpec((D, D), lambda b: (0, 0)),                 # w_o
        pl.BlockSpec((1, D), lambda b: (0, 0)),                 # b_o
        pl.BlockSpec((1, D), lambda b: (0, 0)),                 # ln1 gamma
        pl.BlockSpec((1, D), lambda b: (0, 0)),                 # ln1 beta
        pl.BlockSpec((kf, D, tf), lambda b: (0, 0, 0)),         # w_1 (f-tiled)
        pl.BlockSpec((kf, 1, tf), lambda b: (0, 0, 0)),         # b_1
        pl.BlockSpec((kf, tf, D), lambda b: (0, 0, 0)),         # w_2 (f-tiled)
        pl.BlockSpec((1, D), lambda b: (0, 0)),                 # b_2
        pl.BlockSpec((1, D), lambda b: (0, 0)),                 # ln2 gamma
        pl.BlockSpec((1, D), lambda b: (0, 0)),                 # ln2 beta
    ]
    inputs = [src, pos, p["wq"], p["wk"], p["wv"], p["bq"], p["bk"], p["bv"],
              p["wo"], p["bo"], p["ln1_g"], p["ln1_b"],
              p["w1"], p["b1"], p["w2"], p["b2"], p["ln2_g"], p["ln2_b"]]

    if with_cls:
        ncp = cls_w.shape[1]
        in_specs += [pl.BlockSpec((D, ncp), lambda b: (0, 0)),
                     pl.BlockSpec((1, ncp), lambda b: (0, 0))]
        inputs += [cls_w, cls_b]
        out_specs = pl.BlockSpec((None, 1, ncp), lambda b: (b, 0, 0))
        out_shape = jax.ShapeDtypeStruct((bs, 1, ncp), jnp.float32)
    else:
        out_specs = pl.BlockSpec((None, S, D), lambda b: (b, 0, 0))
        out_shape = jax.ShapeDtypeStruct((bs, S, D), jnp.bfloat16)

    return pl.pallas_call(
        functools.partial(_encoder_layer_kernel, nheads=nheads, kf=kf, eps=eps,
                          with_cls=with_cls),
        grid=(bs,),
        in_specs=in_specs,
        out_specs=out_specs,
        out_shape=out_shape,
        scratch_shapes=[pltpu.VMEM((nheads, S, hd), jnp.bfloat16)],
        compiler_params=pltpu.CompilerParams(dimension_semantics=("parallel",)),
    )(*inputs)


# ------------------------------- glue / model -----------------------------

def positional_encoding(length, d_model):
    assert d_model % 2 == 0, "positional encoding requires an even d_model"
    pos = jnp.arange(length, dtype=jnp.float32)[:, None]
    i = jnp.arange(0, d_model, 2, dtype=jnp.float32)[None, :]
    div = jnp.exp(-math.log(10000.0) * i / d_model)
    pe = jnp.zeros((length, d_model), jnp.float32)
    pe = pe.at[:, 0::2].set(jnp.sin(pos * div))
    pe = pe.at[:, 1::2].set(jnp.cos(pos * div))
    return pe


def fog_net_forward(x, params):
    """x: (bs, in_ch, L) float32  ->  {'pred_logits': (bs, num_classes)}"""
    bs, in_ch, L = x.shape
    D = params["proj_w"].shape[1]
    nheads = params["nheads"]
    num_classes = params["num_classes"]

    # backbone (pointwise Conv1d + ReLU) + input_proj + cls-token prepend
    xt = jnp.transpose(x, (0, 2, 1))                                 # (bs, L, in_ch)
    src = pallas_stem(xt, params["cls_token"], params["backbone_w"],
                      params["backbone_b"], params["proj_w"],
                      params["proj_b"])                              # (bs, S, D) bf16
    S = L + 1
    pos = positional_encoding(S, D)                                  # (S, D) f32

    # DETR-style post-norm transformer encoder: one fused kernel per layer;
    # the classifier is folded into the last layer's kernel (aux_loss=False).
    n_layers = len(params["layers"])
    logits = None
    for li, lp in enumerate(params["layers"]):
        if li < n_layers - 1:
            src = pallas_encoder_layer(src, pos, lp, nheads)
        else:
            logits = pallas_encoder_layer(src, pos, lp, nheads,
                                          cls_w=params["cls_w"],
                                          cls_b=params["cls_b"])     # (bs, 1, NCp)
    return {"pred_logits": logits[:, 0, :num_classes]}


def init_params(key, in_ch, num_channels, hidden, nheads, ffn, num_layers,
                num_classes):
    assert hidden % nheads == 0 and hidden % 2 == 0
    hd = hidden // nheads
    q_scale = 1.0 / math.sqrt(hd)

    # FFN padded so it tiles into lane-dense blocks; classes padded to 128.
    tf = 512 if ffn > 512 else _round_up(ffn, 128)
    ffn_p = _round_up(ffn, tf)
    kf = ffn_p // tf
    ncls_p = _round_up(num_classes, 128)

    keys = iter(jax.random.split(key, 4 + 6 * num_layers))

    def w(shape, scale=0.05):
        return scale * jax.random.normal(next(keys), shape, jnp.float32)

    def head_major(m):                                 # (D, D) -> (nheads, D, hd)
        return jnp.transpose(m.reshape(hidden, nheads, hd), (1, 0, 2))

    params = dict(
        nheads=nheads,
        num_classes=num_classes,
        backbone_w=w((in_ch, num_channels)).astype(jnp.bfloat16),
        backbone_b=jnp.zeros((1, num_channels), jnp.float32),
        proj_w=w((num_channels, hidden)).astype(jnp.bfloat16),
        proj_b=jnp.zeros((1, hidden), jnp.float32),
        cls_token=jax.random.normal(next(keys), (1, hidden), jnp.float32),
        cls_w=jnp.pad(w((hidden, num_classes)),
                      ((0, 0), (0, ncls_p - num_classes))).astype(jnp.bfloat16),
        cls_b=jnp.zeros((1, ncls_p), jnp.float32),
        layers=[],
    )
    for _ in range(num_layers):
        wq = w((hidden, hidden))
        wk = w((hidden, hidden))
        wv = w((hidden, hidden))
        wo = w((hidden, hidden))
        w1 = w((hidden, ffn))
        w2 = w((ffn, hidden))
        bq = jnp.zeros((hidden,), jnp.float32)         # if importing real weights,
        bk = jnp.zeros((hidden,), jnp.float32)         # the q bias must be scaled
        bv = jnp.zeros((hidden,), jnp.float32)         # by 1/sqrt(head_dim) too.
        w1p = jnp.pad(w1, ((0, 0), (0, ffn_p - ffn)))
        w2p = jnp.pad(w2, ((0, ffn_p - ffn), (0, 0)))
        params["layers"].append(dict(
            # head-major weight layouts: the kernel never slices activations at
            # sub-(8,128) offsets; q-scale folded into the q weights and bias.
            wq=head_major(wq * q_scale).astype(jnp.bfloat16),
            wk=head_major(wk).astype(jnp.bfloat16),
            wv=head_major(wv).astype(jnp.bfloat16),
            bq=(bq * q_scale).reshape(nheads, 1, hd),
            bk=bk.reshape(nheads, 1, hd),
            bv=bv.reshape(nheads, 1, hd),
            wo=wo.astype(jnp.bfloat16),
            bo=jnp.zeros((1, hidden), jnp.float32),
            ln1_g=jnp.ones((1, hidden), jnp.float32),
            ln1_b=jnp.zeros((1, hidden), jnp.float32),
            # f-tiled FFN weights: (kf, D, tf) and (kf, tf, D)
            w1=jnp.transpose(w1p.reshape(hidden, kf, tf),
                             (1, 0, 2)).astype(jnp.bfloat16),
            b1=jnp.zeros((kf, 1, tf), jnp.float32),
            w2=w2p.reshape(kf, tf, hidden).astype(jnp.bfloat16),
            b2=jnp.zeros((1, hidden), jnp.float32),
            ln2_g=jnp.ones((1, hidden), jnp.float32),
            ln2_b=jnp.zeros((1, hidden), jnp.float32),
        ))
    return params


if __name__ == "__main__":
    # small, deterministic example shapes (hidden chosen as a multiple of 128 so
    # every store is lane-dense, per the performance review)
    bs, in_ch, L = 2, 4, 16         # e.g. 4 IMU channels, 16 time steps
    num_channels = 16               # backbone.num_channels
    hidden = 128                    # encoder.d_model
    nheads = 4
    ffn = 256
    num_layers = 2
    num_classes = 2                 # FoG vs no-FoG

    key = jax.random.PRNGKey(0)
    k_x, k_p = jax.random.split(key)
    x = jax.random.normal(k_x, (bs, in_ch, L), jnp.float32)
    params = init_params(k_p, in_ch, num_channels, hidden, nheads, ffn,
                         num_layers, num_classes)

    out = fog_net_forward(x, params)
    logits = jax.block_until_ready(out["pred_logits"])
    assert logits.shape == (bs, num_classes)
    assert bool(jnp.all(jnp.isfinite(logits)))
    print("KERNEL_OK")
</pallas_src>

<mosaic_0001>
module attributes {stable_mosaic.version = 11 : i64} {
  func.func @_stem_kernel(%arg0: i32, %arg1: memref<1x16x4xf32, #tpu.memory_space<vmem>>, %arg2: memref<1x128xf32, #tpu.memory_space<vmem>>, %arg3: memref<4x16xbf16, #tpu.memory_space<vmem>>, %arg4: memref<1x16xf32, #tpu.memory_space<vmem>>, %arg5: memref<16x128xbf16, #tpu.memory_space<vmem>>, %arg6: memref<1x128xf32, #tpu.memory_space<vmem>>, %arg7: memref<1x17x128xbf16, #tpu.memory_space<vmem>>) attributes {dimension_semantics = [#tpu.dimension_semantics<parallel>], iteration_bounds = array<i64: 2>, scalar_prefetch = 0 : i64, scratch_operands = 0 : i64, tpu.core_type = #tpu.core_type<tc>, window_params = [{transform_indices = @transform_0, window_bounds = array<i64: 1, 16, 4>}, {pipeline_mode = #tpu.pipeline_mode<synchronous>, transform_indices = @transform_1, window_bounds = array<i64: 1, 128>}, {pipeline_mode = #tpu.pipeline_mode<synchronous>, transform_indices = @transform_2, window_bounds = array<i64: 4, 16>}, {pipeline_mode = #tpu.pipeline_mode<synchronous>, transform_indices = @transform_3, window_bounds = array<i64: 1, 16>}, {pipeline_mode = #tpu.pipeline_mode<synchronous>, transform_indices = @transform_4, window_bounds = array<i64: 16, 128>}, {pipeline_mode = #tpu.pipeline_mode<synchronous>, transform_indices = @transform_5, window_bounds = array<i64: 1, 128>}, {transform_indices = @transform_6, window_bounds = array<i64: 1, 17, 128>}]} {
    %c0 = arith.constant 0 : index
    %c0_0 = arith.constant 0 : index
    %c0_1 = arith.constant 0 : index
    %0 = vector.load %arg1[%c0, %c0_0, %c0_1] : memref<1x16x4xf32, #tpu.memory_space<vmem>>, vector<1x16x4xf32>
    %1 = vector.shape_cast %0 : vector<1x16x4xf32> to vector<16x4xf32>
    %2 = arith.truncf %1 : vector<16x4xf32> to vector<16x4xbf16>
    %c0_2 = arith.constant 0 : index
    %c0_3 = arith.constant 0 : index
    %3 = vector.load %arg3[%c0_2, %c0_3] : memref<4x16xbf16, #tpu.memory_space<vmem>>, vector<4x16xbf16>
    %cst = arith.constant dense<0.000000e+00> : vector<16x16xf32>
    %4 = tpu.matmul %2, %3, %cst {dimension_numbers = #tpu.dot_dimension_numbers<[1], [0], [0], [1], [0, 0, 1, 1], [], []>} : vector<16x4xbf16>, vector<4x16xbf16>, vector<16x16xf32> -> vector<16x16xf32>
    %c0_4 = arith.constant 0 : index
    %c0_5 = arith.constant 0 : index
    %5 = vector.load %arg4[%c0_4, %c0_5] : memref<1x16xf32, #tpu.memory_space<vmem>>, vector<1x16xf32>
    %6 = vector.broadcast %5 : vector<1x16xf32> to vector<16x16xf32>
    %7 = arith.addf %4, %6 : vector<16x16xf32>
    %cst_6 = arith.constant 0.000000e+00 : f32
    %8 = vector.broadcast %cst_6 : f32 to vector<16x16xf32>
    %9 = arith.maximumf %7, %8 : vector<16x16xf32>
    %10 = arith.truncf %9 : vector<16x16xf32> to vector<16x16xbf16>
    %c0_7 = arith.constant 0 : index
    %c0_8 = arith.constant 0 : index
    %11 = vector.load %arg5[%c0_7, %c0_8] : memref<16x128xbf16, #tpu.memory_space<vmem>>, vector<16x128xbf16>
    %cst_9 = arith.constant dense<0.000000e+00> : vector<16x128xf32>
    %12 = tpu.matmul %10, %11, %cst_9 {dimension_numbers = #tpu.dot_dimension_numbers<[1], [0], [0], [1], [0, 0, 1, 1], [], []>} : vector<16x16xbf16>, vector<16x128xbf16>, vector<16x128xf32> -> vector<16x128xf32>
    %c0_10 = arith.constant 0 : index
    %c0_11 = arith.constant 0 : index
    %13 = vector.load %arg6[%c0_10, %c0_11] : memref<1x128xf32, #tpu.memory_space<vmem>>, vector<1x128xf32>
    %14 = vector.broadcast %13 : vector<1x128xf32> to vector<16x128xf32>
    %15 = arith.addf %12, %14 : vector<16x128xf32>
    %c0_12 = arith.constant 0 : index
    %c0_13 = arith.constant 0 : index
    %16 = vector.load %arg2[%c0_12, %c0_13] : memref<1x128xf32, #tpu.memory_space<vmem>>, vector<1x128xf32>
    %17 = tpu.concatenate %16, %15 in 0 : vector<1x128xf32>, vector<16x128xf32> -> vector<17x128xf32>
    %18 = arith.truncf %17 : vector<17x128xf32> to vector<17x128xbf16>
    %c0_14 = arith.constant 0 : index
    %c0_15 = arith.constant 0 : index
    %c0_16 = arith.constant 0 : index
    %19 = vector.load %arg7[%c0_14, %c0_15, %c0_16] : memref<1x17x128xbf16, #tpu.memory_space<vmem>>, vector<1x17x128xbf16>
    %20 = vector.shape_cast %19 : vector<1x17x128xbf16> to vector<17x128xbf16>
    %21 = vector.shape_cast %18 : vector<17x128xbf16> to vector<1x17x128xbf16>
    tpu.vector_store %arg7[%c0_14, %c0_15, %c0_16], %21 {strides = array<i32>} : memref<1x17x128xbf16, #tpu.memory_space<vmem>>, vector<1x17x128xbf16>,
    return
  }
  func.func @transform_0(%arg0: i32) -> (i32, i32, i32) {
    %c0_i32 = arith.constant 0 : i32
    %c0_i32_0 = arith.constant 0 : i32
    %c0_i32_1 = arith.constant 0 : i32
    return %arg0, %c0_i32, %c0_i32_0 : i32, i32, i32
  }
  func.func @transform_1(%arg0: i32) -> (i32, i32) {
    %c0_i32 = arith.constant 0 : i32
    %c0_i32_0 = arith.constant 0 : i32
    %c0_i32_1 = arith.constant 0 : i32
    return %c0_i32, %c0_i32_0 : i32, i32
  }
  func.func @transform_2(%arg0: i32) -> (i32, i32) {
    %c0_i32 = arith.constant 0 : i32
    %c0_i32_0 = arith.constant 0 : i32
    %c0_i32_1 = arith.constant 0 : i32
    return %c0_i32, %c0_i32_0 : i32, i32
  }
  func.func @transform_3(%arg0: i32) -> (i32, i32) {
    %c0_i32 = arith.constant 0 : i32
    %c0_i32_0 = arith.constant 0 : i32
    %c0_i32_1 = arith.constant 0 : i32
    return %c0_i32, %c0_i32_0 : i32, i32
  }
  func.func @transform_4(%arg0: i32) -> (i32, i32) {
    %c0_i32 = arith.constant 0 : i32
    %c0_i32_0 = arith.constant 0 : i32
    %c0_i32_1 = arith.constant 0 : i32
    return %c0_i32, %c0_i32_0 : i32, i32
  }
  func.func @transform_5(%arg0: i32) -> (i32, i32) {
    %c0_i32 = arith.constant 0 : i32
    %c0_i32_0 = arith.constant 0 : i32
    %c0_i32_1 = arith.constant 0 : i32
    return %c0_i32, %c0_i32_0 : i32, i32
  }
  func.func @transform_6(%arg0: i32) -> (i32, i32, i32) {
    %c0_i32 = arith.constant 0 : i32
    %c0_i32_0 = arith.constant 0 : i32
    %c0_i32_1 = arith.constant 0 : i32
    return %arg0, %c0_i32, %c0_i32_0 : i32, i32, i32
  }
}

</mosaic_0001>

<bundles_post_ra>
// kernel: tpu_custom_call.1
= control target key start
LH: loop header
LB: loop body
LE: loop exit
PB: predicated region body
PF: predicated region fallthrough
CT: control target
= control target key end

     0   :  { %s563_s21 = smov 0   ;;  %s599_s0 = inlined_call_operand.vmem [shape: f32[2,16,4], index: 0, kind: input, shape index: {}]   ;;  %s600_s1 = inlined_call_operand.vmem [shape: f32[1,128], index: 1, kind: input, shape index: {}]   ;;  %s601_s2 = inlined_call_operand.vmem [shape: bf16[4,16], index: 2, kind: input, shape index: {}]   ;;  %s602_s3 = inlined_call_operand.vmem [shape: f32[1,16], index: 3, kind: input, shape index: {}]   ;;  %s603_s4 = inlined_call_operand.vmem [shape: bf16[16,128], index: 4, kind: input, shape index: {}]   ;;  %s604_s5 = inlined_call_operand.vmem [shape: f32[1,128], index: 5, kind: input, shape index: {}]   ;;  %s605_s6 = inlined_call_operand.vmem [shape: bf16[2,17,128], index: 6, kind: output, shape index: {}]  }
   0x1 LB: > { %s463_s22 = sadd.s32 4294967295, %s524_s21   ;;  %p467_p0 = scmp.ge.s32.totalorder %s524_s21, 1  ;;  %s524_s21 = sphi %s563_s21, %s16_s21  }
   0x2   : > { %p212_p1 = scmp.lt.s32.totalorder %s524_s21, 3 }
   0x4   : > { %p213_p2 = pnand %p467_p0, %p212_p1 }
   0x5   : > { %v256_v0 = vld [vmem:[%s601_s2] sm:$0x3] (!%p213_p2)  ;;  %vm268_vm0 = vcmask (!%p213_p2), 1041408   ;;  %p242_p3 = scmp.lt.s32.totalorder (!%p213_p2), %s463_s22, 1  ;;  %v526_v1 = vmov (!%p213_p2), 0.0   ;;  %vm527_vm1 = vmmov (!%p213_p2), 0  }
   0x6   : > { %216 = sbr.rel (%p213_p2) target bundleno = 461 (0x1cd), region = 44  ;;  %494 = vmatprep.subr.bf16.mxu0 (!%p213_p2), %v526_v1  ;;  %v270_v2 = vsel (!%p213_p2), %vm268_vm0, %v256_v0, 0  ;;  %496 = vmatprep.mubr.msk.bf16.mxu0 (!%p213_p2), %vm527_vm1, %v526_v1  ;;  %vm264_vm2 = vcmask (!%p213_p2), 31744   ;;  %v517_v6 = vld [vmem:[%s603_s4] sm:$0xff] (!%p213_p2)   ;;  %vm331_vm3 = vcmask (!%p213_p2), 130048   ;;  %vm379_vm5 = vcmask (!%p213_p2), 1040384  }
   0x7   : > { %495 = vmatpush3.bf16.msra.mxu0 (!%p213_p2), %v270_v2  ;;  %500 = vmatprep.subr.bf16.mxu1 (!%p213_p2), %v526_v1  ;;  %v471_v7 = vld [vmem:[%s602_s3] ss:$0 sm:$0xff] (!%p213_p2)  ;;  %vm403_vm4 = vsmask.f32 (!%p213_p2), 256 }
   0x8   : > { %502 = vmatprep.mubr.msk.bf16.mxu1 (!%p213_p2), %vm527_vm1, %v526_v1  ;;  %501 = vmatpush3.bf16.msra.mxu1 (!%p213_p2), %v517_v6  ;;  %v473_v17 = vld [vmem:[%s604_s5] ss:$0 sm:$0xff] (!%p213_p2)  ;;  %vm404_vm6 = vmand (!%p213_p2), %vm379_vm5, %vm403_vm4 }
   0x9   : > { %v376_v25 = vld [vmem:[%s600_s1] sm:$0x1] (!%p213_p2) }
   0xd   : > { %s607_s22 = smov (!%p242_p3, %s463_s22), 1 }
   0xe   : > { %s481_s25 = sshll.u32 %s607_s22, 4  ;;  %s506_s11 = smul.u32 12, %s607_s22 }
   0xf   : > { %s246_s28 = scalar_lea.vmem %s599_s0, %s481_s25 }
  0x10   : > { %v253_v3 = vld [vmem:[%s246_s28] sm:$0xff]  ;;  %v254_v4 = vld [vmem:[%s246_s28 + $0x8] sm:$0xff]  ;;  %s251_s14 = scalar_lea.vmem %s605_s6, %s506_s11 }
  0x11   : > { %v255_v5 = vpack.c.bf16 %v254_v4, %v253_v3  ;;  %v405_v27 = vld [vmem:[%s251_s14 + $0x8] sm:$0x1] }
  0x13   : > { %497 = vmatmul.mubr.msk.bf16.vlgmr.msra.gmra.mrb[0].mxu0 %vm264_vm2, %v255_v5 }
  0xe6   : > { %v306_v8 = vpop.f32.mrb[0].mxu0 }
  0xe7   : > { %v307_v9 = vadd.f32 %v471_v7, %v306_v8  ;;  %v498_v10 = vpop.f32.mrb[1].mxu0 }
  0xe8   : > { %v309_v11 = vpop.f32.mrb[2].mxu0 }
  0xe9   : > { %v310_v12 = vadd.f32 %v471_v7, %v309_v11  ;;  %v499_v13 = vpop.f32.mrb[3].mxu0  ;;  %v313_v14 = vmax.f32 %v307_v9, 0.0 }
  0xeb   : > { %v314_v15 = vmax.f32 %v310_v12, 0.0 }
  0xed   : > { %v315_v16 = vpack.c.bf16 %v314_v15, %v313_v14 }
  0xef   : > { %503 = vmatmul.mubr.msk.bf16.vlgmr.msra.gmra.mrb[0].mxu1 %vm331_vm3, %v315_v16 }
 0x1c2   : > { %v369_v18 = vpop.f32.mrb[0].mxu1 }
 0x1c3   : > { %v370_v19 = vadd.f32 %v473_v17, %v369_v18  ;;  %v504_v20 = vpop.f32.mrb[1].mxu1 }
 0x1c4   : > { %v372_v21 = vpop.f32.mrb[2].mxu1 }
 0x1c5   : > { %v380_v22 = vrot.slane %v370_v19, 7  ;;  %v373_v23 = vadd.f32 %v473_v17, %v372_v21  ;;  %v505_v24 = vpop.f32.mrb[3].mxu1 }
 0x1c7   : > { %v381_v26 = vrot.slane %v373_v23, 7  ;;  %v386_v28 = vsel %vm379_vm5, %v376_v25, %v380_v22 }
 0x1c9   : > { %v382_v29 = vsel %vm379_vm5, %v380_v22, %v381_v26  ;;  %v484_v30 = vpack.c.bf16 %v381_v26, %v381_v26 }
 0x1ca   : > { %v488_v31 = vpack.c.bf16 %v382_v29, %v386_v28 }
 0x1cb   : > { %v406_v32 = vsel %vm404_vm6, %v484_v30, %v405_v27 }
 0x1cc   : > { %489 = vst [vmem:[%s251_s14] sm:$0xff] %v488_v31   ;;  %407 = vst [vmem:[%s251_s14 + $0x8] sm:$0x1] %v406_v32 }
 0x1cd PF: > { %s16_s21 = sadd.s32 1, %s524_s21  }
 0x1ce   : > { %p13_p4 = scmp.ge.s32.totalorder %s16_s21, 4  }
 0x1d0   :  { %15 = sbr.rel (!%p13_p4) target bundleno = 1 (0x1), region = 74 }

</bundles_post_ra>
